<compile_context>
chip_gen: v5e
topology: v5e:2x2
jax: 0.10.0
libtpu: 0.0.40
codegen_flags: <defaults>
</compile_context>

<pallas_src>
import math

import jax
import jax.numpy as jnp
from jax.experimental import pallas as pl
from jax.experimental.pallas import tpu as pltpu


def _round_up(x, m):
    return ((x + m - 1) // m) * m


def _tpu_info():
    try:
        return pltpu.get_tpu_info()
    except Exception:
        return None


def _vmem_budget_bytes():
    """~75% of physical VMEM (leaves headroom for compiler scratch)."""
    cap = None
    info = _tpu_info()
    if info is not None:
        cap = getattr(info, "vmem_capacity_bytes", None)
    if not isinstance(cap, int) or cap <= 0:
        cap = 64 * 1024 * 1024  # v7x-safe floor; v5e/v6e have 128 MiB
    return int(cap * 3 // 4)


def _num_tensorcores_per_chip():
    info = _tpu_info()
    for name in ("num_tensorcores", "tensorcores_per_chip", "num_cores", "core_count"):
        v = getattr(info, name, None) if info is not None else None
        if isinstance(v, int) and v > 0:
            return v
    try:
        kind = jax.devices()[0].device_kind.lower()
    except Exception:
        kind = ""
    # v7x exposes 2 TensorCores per chip; v5e/v6e have 1.
    return 2 if "v7" in kind else 1


def _psn_kernel(w_ref, thr_ref, x_ref, o_ref):
    # w_ref:   (T, T)  f32  time-mixing weight (resident across grid steps)
    # thr_ref: (T, 1)  f32  threshold = -bias  (resident)
    # x_ref:   (T, tm) f32/bf16 activation tile (lanes = flattened B*C*L)
    # o_ref:   (T, tm) out_dtype spikes in {0, 1}
    x = x_ref[...]
    if x.dtype != jnp.float32:
        x = x.astype(jnp.float32)
    # TODO(synk): for T<=8 an unrolled VPU broadcast-FMA would avoid the padded
    # MXU contraction; kernel is HBM-bound so the dot is hidden and kept simple.
    h = jnp.dot(w_ref[...], x, preferred_element_type=jnp.float32)
    # spike = Heaviside(W@x + bias)  ==  (W@x >= -bias); bias folded into thr.
    o_ref[...] = (h >= thr_ref[...]).astype(o_ref.dtype)


def psn_forward(weight, bias, activations, *, tm=65536, out_dtype=jnp.int8,
                use_pallas=None):
    """Parallel Spiking Neuron forward.

    weight:      (T, T) float32
    bias:        (T, 1) or (T,) float32
    activations: (T, B, C, L) float32 or bfloat16 (time-major)
    returns:     (T, B, C, L) `out_dtype` spikes in {0, 1}
    """
    T = activations.shape[0]
    orig_shape = activations.shape
    x2d = activations.reshape(T, -1)          # (T, M); metadata-only reshape
    M = x2d.shape[1]
    M_aligned = _round_up(M, 128)

    weight = weight.astype(jnp.float32)
    bias2d = jnp.asarray(bias, dtype=jnp.float32).reshape(T, 1)

    # ---- tiny-problem fast path --------------------------------------------
    if use_pallas is None:
        use_pallas = M_aligned > 1024
    if not use_pallas:
        h = weight @ x2d.astype(jnp.float32) + bias2d
        return (h >= 0.0).astype(out_dtype).reshape(orig_shape)

    # ---- lane tile selection ------------------------------------------------
    x_itemsize = jnp.dtype(x2d.dtype).itemsize
    out_itemsize = jnp.dtype(out_dtype).itemsize

    tm_eff = min(_round_up(max(tm, 512), 128), M_aligned)

    n_cores = _num_tensorcores_per_chip()
    if n_cores > 1:
        # Only on multi-TC chips: aim for ~2 well-balanced steps per core, but
        # never drop below ~1 MiB of x per step (step overhead floor).
        target_steps = 2 * n_cores
        if pl.cdiv(M, tm_eff) < target_steps:
            min_lanes = _round_up(max(512, (1 << 20) // (T * x_itemsize)), 128)
            cand = _round_up(pl.cdiv(M_aligned, target_steps), 128)
            tm_eff = min(tm_eff, max(min_lanes, cand))
        tm_eff = min(tm_eff, M_aligned)

    # ---- VMEM budgeting: shrink the tile, never under-provision the limit ---
    budget = _vmem_budget_bytes()

    def _blk_bytes(t):
        # double-buffered x + out tiles, plus double-buffered weight/threshold
        return 2 * T * t * (x_itemsize + out_itemsize) + 2 * 4 * (T * T + T)

    while tm_eff > 512 and _blk_bytes(tm_eff) > budget:
        tm_eff = max(512, _round_up(tm_eff // 2, 128))
    # TODO(synk): if T is so large that even tm_eff=512 overflows VMEM, the
    # weight itself needs tiling over a K-reduction grid axis (not needed at
    # the module's T=num_steps scale).

    blk_bytes = _blk_bytes(tm_eff)
    vmem_limit = None
    if blk_bytes > 12 * 1024 * 1024:
        vmem_limit = int(blk_bytes + (4 << 20))   # always >= what blocks need

    grid = (pl.cdiv(M, tm_eff),)

    # Fold bias into the threshold: spike = (W@x + bias >= 0) == (W@x >= -bias).
    thresh = -bias2d

    def _call(dim_sem):
        return pl.pallas_call(
            _psn_kernel,
            out_shape=jax.ShapeDtypeStruct((T, M), out_dtype),
            grid_spec=pltpu.PrefetchScalarGridSpec(
                num_scalar_prefetch=0,
                grid=grid,
                in_specs=[
                    pl.BlockSpec((T, T), lambda i: (0, 0)),       # weight
                    pl.BlockSpec((T, 1), lambda i: (0, 0)),       # -bias
                    pl.BlockSpec((T, tm_eff), lambda i: (0, i)),  # x tile
                ],
                out_specs=pl.BlockSpec((T, tm_eff), lambda i: (0, i)),
            ),
            compiler_params=pltpu.CompilerParams(
                dimension_semantics=dim_sem,
                vmem_limit_bytes=vmem_limit,
            ),
        )(weight, thresh, x2d)

    if n_cores > 1:
        try:
            out = _call((pltpu.CORE_PARALLEL,))
        except Exception:
            out = _call(("parallel",))
    else:
        out = _call(("parallel",))

    return out.reshape(orig_shape)


def init_psn_params(T, key):
    """Deterministic init matching spikingjelly PSN:
    kaiming_uniform_(weight, a=sqrt(5)) -> U(-1/sqrt(T), 1/sqrt(T)); bias = -1.
    """
    bound = 1.0 / math.sqrt(T)
    weight = jax.random.uniform(key, (T, T), jnp.float32, -bound, bound)
    bias = jnp.full((T, 1), -1.0, dtype=jnp.float32)
    return weight, bias


def _check_spikes(spikes, weight, bias, x, eps=1e-4):
    """Tolerance-aware check: mismatches only allowed within eps of threshold
    (MXU vs XLA f32 matmul rounding / bias-folding tie-breaks)."""
    T = x.shape[0]
    h = weight.astype(jnp.float32) @ x.reshape(T, -1).astype(jnp.float32) + \
        jnp.asarray(bias, jnp.float32).reshape(T, 1)
    ref = h >= 0.0
    got_f = spikes.reshape(T, -1).astype(jnp.float32)
    got = got_f > 0.5
    assert bool(jnp.all((got_f == 0.0) | (got_f == 1.0))), "non-binary spikes"
    edge = jnp.abs(h) < eps
    assert bool(jnp.all(jnp.logical_or(got == ref, edge))), "spike mismatch"


if __name__ == "__main__":
    # Small shapes consistent with the module:
    # num_steps T=8, batch B=2, num_features C=4, window_size L=16.
    T, B, C, L = 8, 2, 4, 16

    key = jax.random.PRNGKey(0)
    k_w, k_x1, k_x2, k_x3 = jax.random.split(key, 4)

    weight, bias = init_psn_params(T, k_w)

    # 1) Tiny canonical shape (M=128): exercises the sub-tile jnp fast path.
    x1 = jax.random.normal(k_x1, (T, B, C, L), dtype=jnp.float32)
    s1 = jax.block_until_ready(psn_forward(weight, bias, x1))
    assert s1.shape == x1.shape and s1.dtype == jnp.int8
    _check_spikes(s1, weight, bias, x1)

    # 2) Ragged M (3*4*50 = 600, not a multiple of 128) forced through the
    #    Pallas path with a small tile -> multi-step grid + masked tail store.
    x2 = jax.random.normal(k_x2, (T, 3, 4, 50), dtype=jnp.float32)
    s2 = jax.block_until_ready(
        psn_forward(weight, bias, x2, tm=256, use_pallas=True))
    assert s2.shape == x2.shape and s2.dtype == jnp.int8
    _check_spikes(s2, weight, bias, x2)

    # 3) bf16 activations (no wrapper-side cast), auto-Pallas (M=2048 lanes).
    x3 = jax.random.normal(k_x3, (T, 2, 8, 128), dtype=jnp.float32).astype(jnp.bfloat16)
    s3 = jax.block_until_ready(psn_forward(weight, bias, x3))
    assert s3.shape == x3.shape and s3.dtype == jnp.int8
    _check_spikes(s3, weight, bias, x3, eps=1e-3)

    print("KERNEL_OK")
</pallas_src>

<mosaic_0001>
module attributes {stable_mosaic.version = 11 : i64} {
  func.func @_psn_kernel(%arg0: i32, %arg1: memref<8x8xf32, #tpu.memory_space<vmem>>, %arg2: memref<8x1xf32, #tpu.memory_space<vmem>>, %arg3: memref<8x512xf32, #tpu.memory_space<vmem>>, %arg4: memref<8x512xi8, #tpu.memory_space<vmem>>) attributes {dimension_semantics = [#tpu.dimension_semantics<parallel>], iteration_bounds = array<i64: 2>, scalar_prefetch = 0 : i64, scratch_operands = 0 : i64, tpu.core_type = #tpu.core_type<tc>, window_params = [{pipeline_mode = #tpu.pipeline_mode<synchronous>, transform_indices = @transform_0, window_bounds = array<i64: 8, 8>}, {pipeline_mode = #tpu.pipeline_mode<synchronous>, transform_indices = @transform_1, window_bounds = array<i64: 8, 1>}, {transform_indices = @transform_2, window_bounds = array<i64: 8, 512>}, {transform_indices = @transform_3, window_bounds = array<i64: 8, 512>}]} {
    %c0 = arith.constant 0 : index
    %c0_0 = arith.constant 0 : index
    %0 = vector.load %arg3[%c0, %c0_0] : memref<8x512xf32, #tpu.memory_space<vmem>>, vector<8x512xf32>
    %c0_1 = arith.constant 0 : index
    %c0_2 = arith.constant 0 : index
    %1 = vector.load %arg1[%c0_1, %c0_2] : memref<8x8xf32, #tpu.memory_space<vmem>>, vector<8x8xf32>
    %cst = arith.constant dense<0.000000e+00> : vector<8x512xf32>
    %2 = tpu.matmul %1, %0, %cst {dimension_numbers = #tpu.dot_dimension_numbers<[1], [0], [0], [1], [0, 0, 1, 1], [], []>} : vector<8x8xf32>, vector<8x512xf32>, vector<8x512xf32> -> vector<8x512xf32>
    %c0_3 = arith.constant 0 : index
    %c0_4 = arith.constant 0 : index
    %3 = vector.load %arg2[%c0_3, %c0_4] : memref<8x1xf32, #tpu.memory_space<vmem>>, vector<8x1xf32>
    %4 = vector.broadcast %3 : vector<8x1xf32> to vector<8x512xf32>
    %5 = arith.cmpf oge, %2, %4 : vector<8x512xf32>
    %6 = arith.extui %5 : vector<8x512xi1> to vector<8x512xi8>
    %c0_5 = arith.constant 0 : index
    %c0_6 = arith.constant 0 : index
    %7 = vector.load %arg4[%c0_5, %c0_6] : memref<8x512xi8, #tpu.memory_space<vmem>>, vector<8x512xi8>
    tpu.vector_store %arg4[%c0_5, %c0_6], %6 {strides = array<i32>} : memref<8x512xi8, #tpu.memory_space<vmem>>, vector<8x512xi8>,
    return
  }
  func.func @transform_0(%arg0: i32) -> (i32, i32) {
    %c0_i32 = arith.constant 0 : i32
    %c0_i32_0 = arith.constant 0 : i32
    %c0_i32_1 = arith.constant 0 : i32
    return %c0_i32, %c0_i32_0 : i32, i32
  }
  func.func @transform_1(%arg0: i32) -> (i32, i32) {
    %c0_i32 = arith.constant 0 : i32
    %c0_i32_0 = arith.constant 0 : i32
    %c0_i32_1 = arith.constant 0 : i32
    return %c0_i32, %c0_i32_0 : i32, i32
  }
  func.func @transform_2(%arg0: i32) -> (i32, i32) {
    %c0_i32 = arith.constant 0 : i32
    %c0_i32_0 = arith.constant 0 : i32
    return %c0_i32, %arg0 : i32, i32
  }
  func.func @transform_3(%arg0: i32) -> (i32, i32) {
    %c0_i32 = arith.constant 0 : i32
    %c0_i32_0 = arith.constant 0 : i32
    return %c0_i32, %arg0 : i32, i32
  }
}

</mosaic_0001>

<bundles_post_ra>
// kernel: tpu_custom_call.1
= control target key start
LH: loop header
LB: loop body
LE: loop exit
PB: predicated region body
PF: predicated region fallthrough
CT: control target
= control target key end

     0   :  { %8 = vsyncpa [#allocation3], 0  ;;  %s807_s0 = inlined_call_operand.vmem [shape: f32[8,8], index: 0, kind: input, shape index: {}]   ;;  %s808_s1 = inlined_call_operand.vmem [shape: f32[8,1], index: 1, kind: input, shape index: {}]   ;;  %s809_s2 = inlined_call_operand.hbm [shape: f32[8,600], index: 2, kind: input, shape index: {}]   ;;  %s810_s3 = inlined_call_operand.hbm [shape: s8[8,600], index: 3, kind: output, shape index: {}]  }
   0x1   :  { %10 = vsyncpa [#allocation3 + $0x1], 0 }
   0x2   :  { %11 = vsyncpa [#allocation4], 0 }
   0x3   :  { %13 = vsyncpa [#allocation4 + $0x1], 0  ;;  %s643_s12 = smov 0   ;;  %s645_s13 = smov 0  }
   0x4   :  { %s647_s14 = smov 0   ;;  %s649_s15 = smov 0  }
   0x5 LB: > { %s664_s16 = sadd.s32 4294967295, %s618_s15   ;;  %s433_s17 = sadd.s32 4294967294, %s618_s15   ;;  %s618_s15 = sphi %s649_s15, %s823_s15   ;;  %s614_s14 = sphi %s647_s14, %s822_s14   ;;  %s610_s13 = sphi %s645_s13, %s821_s13   ;;  %s606_s12 = sphi %s643_s12, %s820_s12  }
   0x6   : > { %s668_s18 = sadd.s32 1, %s618_s15   ;;  %s68_s19 = sadd.s32 1, %s614_s14 }
   0x7   : > { %s65_s20 = ssub.s32 %s618_s15, %s668_s18  ;;  %p75_p0 = scmp.ne.s32.totalorder %s614_s14, %s610_s13 }
   0x8   : > { %p66_p1 = scmp.eq.s32.totalorder %s65_s20, 0  ;;  %p76_p2 = scmp.eq.s32.totalorder %s618_s15, 0 }
   0x9   : > { %p81_p3 = scmp.ne.s32.totalorder %s610_s13, %s606_s12  ;;  %p82_p4 = scmp.eq.s32.totalorder %s664_s16, 0 }
   0xa   : > { %s680_s21 = scalar_select %p66_p1, %s614_s14, %s68_s19  }
   0xb   : > { %p77_p5 = por %p76_p2, %p75_p0  ;;  %p682_p6 = por %p82_p4, %p81_p3 }
   0xc   : > { %p105_p7 = scmp.eq.s32.totalorder %s664_s16, 1  ;;  %p111_p8 = scmp.eq.s32.totalorder %s433_s17, 1 }
   0xd   : > { %p812_p11 = scmp.ge.s32.totalorder %s618_s15, 2 }
   0xe   : > { %p687_p9 = por %p105_p7, %p75_p0  ;;  %p691_p10 = por %p111_p8, %p81_p3 }
   0xf   : > { %133 = sbr.rel (%p812_p11) target bundleno = 56 (0x38), region = 24 }
  0x14   : > { %136 = sbr.rel (!%p77_p5) target bundleno = 56 (0x38), region = 28  ;;  %s137_s25 = sand.u32 (%p77_p5), 1, %s614_s14  }
  0x15   : > { %s437_s26 = sshll.u32 (%p77_p5), %s618_s15, 2  ;;  %s436_s27 = sshll.u32 (%p77_p5), %s137_s25, 5 }
  0x16   : > { %s143_s28 = ssub.s32 (%p77_p5), 5, %s437_s26  ;;  %s703_s5 = scalar_lea.sflag (%p77_p5), [#allocation3], %s137_s25 }
  0x17   : > { %p144_p12 = scmp.lt.s32.totalorder (%p77_p5), %s143_s28, 4  ;;  %s141_s6 = scalar_lea.vmem (%p77_p5), [#allocation2], %s436_s27 }
  0x19   : > { %s825_s28 = smov (!%p144_p12, %s143_s28), 4 }
  0x1a   : > { %s438_s29 = sshll.u32 %s825_s28, 3 }
  0x1b   : > { %s147_s30 = ssub.s32 32, %s438_s29 }
  0x1c   : > { %s148_s4 = sshll.u32 %s147_s30, 4 }
  0x1d   : > { %149 = vsyncadd %s703_s5, %s148_s4  ;;  %p706_p13 = scmp.ne.s32.totalorder %s438_s29, 0  ;;  %s459_s8 = sshll.u32 %s618_s15, 5 }
  0x1e   : > { %s152_s11 = scalar_lea.hbm %s809_s2, %s459_s8  ;;  %s811_s17 = sshll.u32 %s825_s28, 7 }
  0x1f   : > { %s155_s19 = sshll.u32 %s152_s11, 4  ;;  %s715_s20 = sshll.u32 %s141_s6, 4  ;;  %s156_s19 = int_to_ptr.hbm [resolvable:$true] %s155_s19  ;;  %s158_s20 = int_to_ptr.vmem [resolvable:$true] %s715_s20 }
  0x20   : > { %s502_s25 = sshra.s32 %s156_s19, 4  ;;  %s504_s26 = sshrl.u32 %s811_s17, 4  ;;  %s503_s25 = int_to_ptr.hbm [resolvable:$true] %s502_s25 }
  0x21   : > { %s509_s27 = scalar_lea.hbm %s503_s25, %s504_s26  ;;  %s513_s4 = scalar_lea.hbm %s809_s2, 40 }
  0x22   : > { %p510_p0 = scmp.ne.s32.totalorder %s503_s25, %s509_s27  ;;  %p514_p3 = scmp.lt.s32.totalorder %s503_s25, %s809_s2 }
  0x23   : > { %p515_p4 = scmp.lt.s32.totalorder %s513_s4, %s509_s27 }
  0x24   : > { %p511_p1 = pnand %p510_p0, %p706_p13 }
  0x25   : > { %p516_p5 = por %p515_p4, %p514_p3 }
  0x26   : > { %p512_p2 = pneg %p511_p1 }
  0x28   : > { %p517_p7 = pnand %p516_p5, %p512_p2 }
  0x2a   : > { %520 = shalt.err (!%p517_p7)
}
  0x2b   : > { %s521_s6 = sshra.s32 %s158_s20, 4  ;;  %s620_s11 = smov [#allocation2]   ;;  %s522_s6 = int_to_ptr.vmem [resolvable:$true] %s521_s6 }
  0x2c   : > { %s528_s10 = scalar_lea.vmem %s522_s6, %s504_s26  ;;  %s532_s17 = scalar_lea.vmem %s620_s11, 64 }
  0x2d   : > { %p529_p8 = scmp.ne.s32.totalorder %s522_s6, %s528_s10  ;;  %p534_p1 = scmp.lt.s32.totalorder %s532_s17, %s528_s10 }
  0x2f   : > { %p530_p12 = pnand %p529_p8, %p706_p13 }
  0x31   : > { %p531_p0 = pneg %p530_p12 }
  0x33   : > { %p536_p11 = pnand %p534_p1, %p531_p0 }
  0x35   : > { %539 = shalt.err (!%p536_p11)
}
  0x36   : > { %s817_s25 = sshll.u32 %s825_s28, 7 }
  0x37   : > { %160 = dma.hbm_to_vmem [thread:$0]  (%p706_p13), %s156_s19, %s817_s25, %s158_s20, %s703_s5  }
  0x38 PF: > { %p443_p2 = scmp.ge.s32.totalorder %s618_s15, 1  ;;  %p162_p3 = scmp.lt.s32.totalorder %s618_s15, 3 }
  0x3a   : > { %p163_p4 = pnand %p443_p2, %p162_p3 }
  0x3b   : > { %s738_s26 = sand.u32 (!%p163_p4), 1, %s610_s13  }
  0x3c   : > { %166 = sbr.rel (%p163_p4) target bundleno = 245 (0xf5), region = 32  ;;  %s444_s17 = sshll.u32 (!%p163_p4), %s738_s26, 5 }
  0x3d   : > { %s169_s7 = scalar_lea.sflag (!%p163_p4), [#allocation3], %s738_s26  ;;  %s172_s27 = scalar_lea.vmem (!%p163_p4), [#allocation2], %s444_s17 }
  0x41   : > { %597 = dma.done.wait (%p682_p6), %s169_s7, 512  }
  0x42   : > { %599 = vsyncadd (%p682_p6), %s169_s7, 4294966784  ;;  %v621_v0 = vmov 0   ;;  %vm213_vm0 = vcmask 64512   ;;  %v210_v1 = vld [vmem:[%s172_s27 + $0x10] sm:$0xff]  ;;  %v211_v2 = vld [vmem:[%s172_s27 + $0x18] sm:$0xff]  ;;  %s445_s22 = sshll.u32 %s738_s26, 3 }
  0x43   : > { %501 = vset.pattern.permute.xlu0 %v621_v0  ;;  %v212_v3 = vld [vmem:[%s807_s0] sm:$0xff]  ;;  %272 = vmatpush.msra.mxu2 %v210_v1  ;;  %v209_v5 = vld [vmem:[%s172_s27 + $0x8] sm:$0xff]  ;;  %s195_s29 = scalar_lea.vmem [#allocation5], %s445_s22  ;;  %s340_s30 = scalar_lea.sflag [#allocation4], %s738_s26 }
  0x44   : > { %292 = vmatpush.msra.mxu3 %v211_v2  ;;  %v208_v4 = vld [vmem:[%s172_s27] sm:$0xff]  ;;  %448 = vmatmul.msk.f32.vlgmr.msra.gmra.mxu2 %vm213_vm0, %v212_v3  ;;  %s451_s4 = sshll.u32 (%p687_p9), %s664_s16, 2 }
  0x45   : > { %449 = vmatmul.msk.f32.vlgmr.msra.gmra.mxu3 %vm213_vm0, %v212_v3  ;;  %v297_v6 = vld [vmem:[%s808_s1] sm:$0xff]  ;;  %232 = vmatpush.msra.mxu0 %v208_v4  ;;  %s348_s8 = ssub.s32 (%p687_p9), 5, %s451_s4 }
  0x46   : > { %252 = vmatpush.msra.mxu1 %v209_v5  ;;  %446 = vmatmul.msk.f32.vlgmr.msra.gmra.mxu0 %vm213_vm0, %v212_v3  ;;  %p349_p6 = scmp.lt.s32.totalorder (%p687_p9), %s348_s8, 4 }
  0x47   : > { %447 = vmatmul.msk.f32.vlgmr.msra.gmra.mxu1 %vm213_vm0, %v212_v3  ;;  %300 = vperm.xlu0 %501, %v297_v6  }
  0xb9   : > { %v301_v7 = vpop.permute.xlu0 %300 }
  0xc3   : > { %v234_v8 = vpop.f32.mrf.mxu0 }
  0xc4   : > { %v254_v9 = vpop.f32.mrf.mxu1  ;;  %vm303_vm1 = vcmp.ge.f32.partialorder %v234_v8, %v301_v7 }
  0xc5   : > { %vm304_vm2 = vcmp.ge.f32.partialorder %v254_v9, %v301_v7  ;;  %vm307_vm3 = vmpackc.low %vm303_vm1, %vm303_vm1 }
  0xc6   : > { %v308_v10 = vsel %vm307_vm3, 16711935, %v621_v0  ;;  %vm312_vm4 = vmpackc.low %vm304_vm2, %vm304_vm2 }
  0xc7   : > { %v310_v11 = vpack.c.b8 %v308_v10, %v308_v10  ;;  %v313_v12 = vsel %vm312_vm4, 16711935, %v621_v0  ;;  %v274_v13 = vpop.f32.mrf.mxu2 }
  0xc8   : > { %v294_v14 = vpop.f32.mrf.mxu3  ;;  %v315_v15 = vpack.c.b8 %v313_v12, %v313_v12  ;;  %vm305_vm5 = vcmp.ge.f32.partialorder %v274_v13, %v301_v7 }
  0xc9   : > { %vm306_vm6 = vcmp.ge.f32.partialorder %v294_v14, %v301_v7  ;;  %vm311_vm7 = vnez %v310_v11  ;;  %vm317_vm8 = vmpackc.low %vm305_vm5, %vm305_vm5 }
  0xca   : > { %v327_v16 = vsel %vm311_vm7, 16843009, %v621_v0  ;;  %vm316_vm9 = vnez %v315_v15  ;;  %v318_v17 = vsel %vm317_vm8, 16711935, %v621_v0  ;;  %vm322_vm10 = vmpackc.low %vm306_vm6, %vm306_vm6 }
  0xcb   : > { %v328_v18 = vsel %vm316_vm9, 16843009, %v621_v0  ;;  %v320_v19 = vpack.c.b8 %v318_v17, %v318_v17  ;;  %v323_v20 = vsel %vm322_vm10, 16711935, %v621_v0  ;;  %v331_v21 = vunpack.c.0.s8 %v327_v16 }
  0xcc   : > { %v332_v22 = vunpack.c.0.s8 %v328_v18  ;;  %v325_v23 = vpack.c.b8 %v323_v20, %v323_v20 }
  0xcd   : > { %vm321_vm11 = vnez %v320_v19 }
  0xce   : > { %v329_v24 = vsel %vm321_vm11, 16843009, %v621_v0  ;;  %vm326_vm12 = vnez %v325_v23  ;;  %v335_v27 = vpack.c.b16 %v332_v22, %v331_v21 }
  0xcf   : > { %v333_v25 = vunpack.c.0.s8 %v329_v24  ;;  %v330_v26 = vsel %vm326_vm12, 16843009, %v621_v0 }
  0xd0   : > { %v334_v28 = vunpack.c.0.s8 %v330_v26 }
  0xd2   : > { %v336_v29 = vpack.c.b16 %v334_v28, %v333_v25  ;;  %346 = sbr.rel (!%p687_p9) target bundleno = 245 (0xf5), region = 40 }
  0xd4   : > { %v337_v30 = vpack.c.b8 %v336_v29, %v335_v27 }
  0xd6   : > { %338 = vst [vmem:[%s195_s29] sm:$0xff] %v337_v30 }
  0xd7   : > { %s827_s8 = smov (!%p349_p6, %s348_s8), 4 }
  0xd8   : > { %s452_s9 = sshll.u32 %s827_s8, 1 }
  0xd9   : > { %s352_s6 = ssub.s32 8, %s452_s9 }
  0xda   : > { %s353_s10 = sshll.u32 %s352_s6, 4 }
  0xdb   : > { %354 = vsyncadd %s340_s30, %s353_s10  ;;  %p762_p11 = scmp.ne.s32.totalorder %s452_s9, 0  ;;  %s460_s23 = sshll.u32 %s664_s16, 3 }
  0xdc   : > { %s357_s7 = scalar_lea.hbm %s810_s3, %s460_s23  ;;  %s456_s27 = sshll.u32 %s827_s8, 5 }
  0xdd   : > { %s360_s28 = sshll.u32 %s195_s29, 4  ;;  %s362_s5 = sshll.u32 %s357_s7, 4  ;;  %s361_s28 = int_to_ptr.vmem [resolvable:$true] %s360_s28  ;;  %s363_s5 = int_to_ptr.hbm [resolvable:$true] %s362_s5 }
  0xde   : > { %s541_s19 = sshra.s32 %s361_s28, 4  ;;  %s543_s20 = sshrl.u32 %s456_s27, 4  ;;  %s542_s19 = int_to_ptr.vmem [resolvable:$true] %s541_s19 }
  0xdf   : > { %s548_s22 = scalar_lea.vmem %s542_s19, %s543_s20  ;;  %s622_s4 = smov [#allocation5]  }
  0xe0   : > { %p549_p9 = scmp.ne.s32.totalorder %s542_s19, %s548_s22  ;;  %s552_s16 = scalar_lea.vmem %s622_s4, 16 }
  0xe1   : > { %p554_p7 = scmp.lt.s32.totalorder %s552_s16, %s548_s22 }
  0xe2   : > { %p550_p13 = pnand %p549_p9, %p762_p11 }
  0xe4   : > { %p551_p5 = pneg %p550_p13 }
  0xe6   : > { %p556_p8 = pnand %p554_p7, %p551_p5 }
  0xe8   : > { %559 = shalt.err (!%p556_p8)
}
  0xe9   : > { %s560_s9 = sshra.s32 %s363_s5, 4  ;;  %s571_s23 = scalar_lea.hbm %s810_s3, 10  ;;  %s561_s9 = int_to_ptr.hbm [resolvable:$true] %s560_s9 }
  0xea   : > { %s567_s29 = scalar_lea.hbm %s561_s9, %s543_s20  ;;  %p572_p2 = scmp.lt.s32.totalorder %s561_s9, %s810_s3 }
  0xeb   : > { %p568_p12 = scmp.ne.s32.totalorder %s561_s9, %s567_s29  ;;  %p573_p3 = scmp.lt.s32.totalorder %s571_s23, %s567_s29 }
  0xed   : > { %p569_p0 = pnand %p568_p12, %p762_p11  ;;  %p574_p4 = por %p573_p3, %p572_p2 }
  0xef   : > { %p570_p1 = pneg %p569_p0 }
  0xf1   : > { %p575_p6 = pnand %p574_p4, %p570_p1 }
  0xf3   : > { %578 = shalt.err (!%p575_p6)
}
  0xf4   : > { %365 = dma.vmem_to_hbm [thread:$0]  (%p762_p11), %s361_s28, %s456_s27, %s363_s5, %s340_s30  }
  0xf5 PF: > { %s374_s7 = sand.u32 1, %s606_s12   ;;  %p819_p9 = scmp.ge.s32.totalorder %s618_s15, 2 }
  0xf6   : > { %s375_s19 = scalar_lea.sflag [#allocation4], %s374_s7 }
  0xf7   : > { %p464_p13 = pnand %p819_p9, %p691_p10 }
  0xf9   : > { %p465_p5 = pneg %p464_p13 }
  0xfb   : > { %601 = dma.done.wait (%p465_p5), %s375_s19, 128  }
  0xfc   : > { %603 = vsyncadd (%p465_p5), %s375_s19, 4294967168  ;;  %p16_p7 = scmp.ge.s32.totalorder %s668_s18, 4   ;;  %s820_s12 = smov %s610_s13 }
  0xfd   : > { %s821_s13 = smov %s614_s14  ;;  %s822_s14 = smov %s680_s21 }
  0xfe   : > { %s823_s15 = smov %s668_s18  ;;  %18 = sbr.rel (!%p16_p7) target bundleno = 5 (0x5), region = 77 }
 0x103   :  { %381 = vsyncpa [#allocation3], 1 }
 0x104   :  { %383 = vsyncpa [#allocation3 + $0x1], 1 }
 0x105   :  { %384 = vsyncpa [#allocation4], 1 }
 0x106   :  { %386 = vsyncpa [#allocation4 + $0x1], 1 }

</bundles_post_ra>
